<compile_context>
chip_gen: v7x
topology: tpu7x:2x2x1
jax: 0.10.0
libtpu: 0.0.40
codegen_flags: <defaults>
</compile_context>

<pallas_src>
import jax
import jax.numpy as jnp
from jax import lax
from jax.experimental import pallas as pl
from jax.experimental.pallas import tpu as pltpu


def _grad_mag_kernel(x_ref, o_ref):
    # x_ref / o_ref: (CB, H, W) block of independent single-channel planes.
    cb, H, W = x_ref.shape
    f32 = jnp.float32

    # Signed neighbour coefficients, built once per block.  For each circular
    # roll the coefficient is +1 where the roll delivers the "next" element,
    # -1 where it delivers the "previous" element and 0 on the wrapped border
    # row/col (zero padding).  Requires spatial dims != 2 (fine for real use).
    row = lax.broadcasted_iota(jnp.int32, (H, W), 0).astype(f32)
    col = lax.broadcasted_iota(jnp.int32, (H, W), 1).astype(f32)

    dra = pltpu.roll(row, H - 1, axis=0) - row
    drb = pltpu.roll(row, 1, axis=0) - row
    dca = pltpu.roll(col, W - 1, axis=1) - col
    dcb = pltpu.roll(col, 1, axis=1) - col

    sra = jnp.where(jnp.abs(dra) == 1.0, dra, 0.0)
    srb = jnp.where(jnp.abs(drb) == 1.0, drb, 0.0)
    sca = jnp.where(jnp.abs(dca) == 1.0, dca, 0.0)
    scb = jnp.where(jnp.abs(dcb) == 1.0, dcb, 0.0)

    def body(c, carry):
        xp = x_ref[c]  # (H, W) plane
        gv = pltpu.roll(xp, H - 1, axis=0) * sra + pltpu.roll(xp, 1, axis=0) * srb
        gh = pltpu.roll(xp, W - 1, axis=1) * sca + pltpu.roll(xp, 1, axis=1) * scb
        o_ref[c] = jnp.sqrt(gv * gv + gh * gh + 1e-6).astype(o_ref.dtype)
        return carry

    lax.fori_loop(0, cb, body, 0)


def get_gradient(x, *, target_block_bytes=2 << 20):
    """x: (N, C, H, W) float32 -> (N, C, H, W) gradient magnitude (C == 3 in the module)."""
    N, C, H, W = x.shape
    dtype = x.dtype
    itemsize = x.dtype.itemsize

    # Lane density: put the larger spatial dim on the 128-lane axis when W is
    # tiny but H is lane-sized.  Gradient magnitude is symmetric under swapping
    # the two spatial axes, so a plain transpose in/out is enough.
    transpose = (W < 128) and (H >= 128) and (H > W)
    if transpose:
        x = jnp.swapaxes(x, 2, 3)
        H, W = W, H

    planes = N * C
    xf = x.reshape(planes, H, W)
    plane_bytes = H * W * itemsize

    # Batch enough planes per block for ~0.5-2 MiB DMAs, but keep >=2 grid
    # steps when possible so v7x can shard the parallel axis over both TCs.
    cb = int(max(1, min(planes, target_block_bytes // max(plane_bytes, 1))))
    if cb >= planes and planes > 1:
        cb = int(pl.cdiv(planes, 2))
    grid = (pl.cdiv(planes, cb),)

    # Double-buffered input + output blocks (4 copies) + headroom.
    block_bytes = cb * plane_bytes
    vmem_limit = int(min(max(4 * block_bytes + (4 << 20), 32 << 20), 64 << 20))
    # TODO(synk): for single planes larger than ~8 MiB add an H-tiled path with
    # a 1-row halo so the resident footprint also fits v7x's 64 MiB VMEM.

    total = planes * H * W
    cost = pl.CostEstimate(
        flops=10 * total,
        transcendentals=total,
        bytes_accessed=2 * total * itemsize,
    )

    out = pl.pallas_call(
        _grad_mag_kernel,
        out_shape=jax.ShapeDtypeStruct((planes, H, W), dtype),
        grid=grid,
        in_specs=[pl.BlockSpec((cb, H, W), lambda i: (i, 0, 0))],
        out_specs=pl.BlockSpec((cb, H, W), lambda i: (i, 0, 0)),
        compiler_params=pltpu.CompilerParams(
            dimension_semantics=("parallel",),
            vmem_limit_bytes=vmem_limit,
        ),
        cost_estimate=cost,
    )(xf)

    out = out.reshape(N, C, H, W)
    if transpose:
        out = jnp.swapaxes(out, 2, 3)
    return out


def _reference(x):
    # Plain-JAX reference of the PyTorch forward (conv2d with fixed 3x3 kernels).
    xp = jnp.pad(x, ((0, 0), (0, 0), (1, 1), (1, 1)))
    gv = xp[:, :, 2:, 1:-1] - xp[:, :, :-2, 1:-1]   # x(i+1,j) - x(i-1,j)
    gh = xp[:, :, 1:-1, 2:] - xp[:, :, 1:-1, :-2]   # x(i,j+1) - x(i,j-1)
    return jnp.sqrt(gv * gv + gh * gh + 1e-6)


if __name__ == "__main__":
    key = jax.random.PRNGKey(0)
    x = jax.random.normal(key, (2, 3, 16, 16), dtype=jnp.float32)

    out = jax.block_until_ready(get_gradient(x))
    ref = _reference(x)

    assert out.shape == (2, 3, 16, 16)
    assert jnp.allclose(out, ref, atol=1e-5, rtol=1e-5)
    print("KERNEL_OK")
</pallas_src>

<mosaic_0001>
module attributes {stable_mosaic.version = 11 : i64} {
  func.func @_grad_mag_kernel(%arg0: i32, %arg1: memref<3x16x16xf32, #tpu.memory_space<vmem>>, %arg2: memref<3x16x16xf32, #tpu.memory_space<vmem>>) attributes {dimension_semantics = [#tpu.dimension_semantics<parallel>], iteration_bounds = array<i64: 2>, scalar_prefetch = 0 : i64, scratch_operands = 0 : i64, tpu.core_type = #tpu.core_type<tc>, window_params = [{transform_indices = @transform_0, window_bounds = array<i64: 3, 16, 16>}, {transform_indices = @transform_1, window_bounds = array<i64: 3, 16, 16>}]} {
    %0 = tpu.iota {dimensions = array<i32: 0>} : vector<16x16xi32>
    %1 = arith.sitofp %0 : vector<16x16xi32> to vector<16x16xf32>
    %2 = tpu.iota {dimensions = array<i32: 1>} : vector<16x16xi32>
    %3 = arith.sitofp %2 : vector<16x16xi32> to vector<16x16xf32>
    %c15_i32 = arith.constant 15 : i32
    %4 = tpu.dynamic_rotate %1 by %c15_i32 dim 0 : vector<16x16xf32>, i32 -> vector<16x16xf32>
    %5 = arith.subf %4, %1 : vector<16x16xf32>
    %c1_i32 = arith.constant 1 : i32
    %6 = tpu.dynamic_rotate %1 by %c1_i32 dim 0 : vector<16x16xf32>, i32 -> vector<16x16xf32>
    %7 = arith.subf %6, %1 : vector<16x16xf32>
    %c15_i32_0 = arith.constant 15 : i32
    %8 = tpu.dynamic_rotate %3 by %c15_i32_0 dim 1 : vector<16x16xf32>, i32 -> vector<16x16xf32>
    %9 = arith.subf %8, %3 : vector<16x16xf32>
    %c1_i32_1 = arith.constant 1 : i32
    %10 = tpu.dynamic_rotate %3 by %c1_i32_1 dim 1 : vector<16x16xf32>, i32 -> vector<16x16xf32>
    %11 = arith.subf %10, %3 : vector<16x16xf32>
    %12 = math.absf %5 : vector<16x16xf32>
    %cst = arith.constant 1.000000e+00 : f32
    %13 = vector.broadcast %cst : f32 to vector<16x16xf32>
    %14 = arith.cmpf oeq, %12, %13 : vector<16x16xf32>
    %cst_2 = arith.constant 0.000000e+00 : f32
    %15 = vector.broadcast %cst_2 : f32 to vector<16x16xf32>
    %16 = arith.select %14, %5, %15 : vector<16x16xi1>, vector<16x16xf32>
    %17 = math.absf %7 : vector<16x16xf32>
    %cst_3 = arith.constant 1.000000e+00 : f32
    %18 = vector.broadcast %cst_3 : f32 to vector<16x16xf32>
    %19 = arith.cmpf oeq, %17, %18 : vector<16x16xf32>
    %cst_4 = arith.constant 0.000000e+00 : f32
    %20 = vector.broadcast %cst_4 : f32 to vector<16x16xf32>
    %21 = arith.select %19, %7, %20 : vector<16x16xi1>, vector<16x16xf32>
    %22 = math.absf %9 : vector<16x16xf32>
    %cst_5 = arith.constant 1.000000e+00 : f32
    %23 = vector.broadcast %cst_5 : f32 to vector<16x16xf32>
    %24 = arith.cmpf oeq, %22, %23 : vector<16x16xf32>
    %cst_6 = arith.constant 0.000000e+00 : f32
    %25 = vector.broadcast %cst_6 : f32 to vector<16x16xf32>
    %26 = arith.select %24, %9, %25 : vector<16x16xi1>, vector<16x16xf32>
    %27 = math.absf %11 : vector<16x16xf32>
    %cst_7 = arith.constant 1.000000e+00 : f32
    %28 = vector.broadcast %cst_7 : f32 to vector<16x16xf32>
    %29 = arith.cmpf oeq, %27, %28 : vector<16x16xf32>
    %cst_8 = arith.constant 0.000000e+00 : f32
    %30 = vector.broadcast %cst_8 : f32 to vector<16x16xf32>
    %31 = arith.select %29, %11, %30 : vector<16x16xi1>, vector<16x16xf32>
    %c0_i32 = arith.constant 0 : i32
    %c3_i32 = arith.constant 3 : i32
    %32 = arith.addi %c0_i32, %c3_i32 : i32
    %c1_i32_9 = arith.constant 1 : i32
    scf.for %arg3 = %c0_i32 to %32 step %c1_i32_9  : i32 {
      %33 = arith.index_cast %arg3 : i32 to index
      %c0 = arith.constant 0 : index
      %c0_11 = arith.constant 0 : index
      %34 = vector.load %arg1[%33, %c0, %c0_11] : memref<3x16x16xf32, #tpu.memory_space<vmem>>, vector<1x16x16xf32>
      %35 = vector.shape_cast %34 : vector<1x16x16xf32> to vector<16x16xf32>
      %c15_i32_12 = arith.constant 15 : i32
      %36 = tpu.dynamic_rotate %35 by %c15_i32_12 dim 0 : vector<16x16xf32>, i32 -> vector<16x16xf32>
      %37 = arith.mulf %36, %16 : vector<16x16xf32>
      %c1_i32_13 = arith.constant 1 : i32
      %38 = tpu.dynamic_rotate %35 by %c1_i32_13 dim 0 : vector<16x16xf32>, i32 -> vector<16x16xf32>
      %39 = arith.mulf %38, %21 : vector<16x16xf32>
      %40 = arith.addf %37, %39 : vector<16x16xf32>
      %c15_i32_14 = arith.constant 15 : i32
      %41 = tpu.dynamic_rotate %35 by %c15_i32_14 dim 1 : vector<16x16xf32>, i32 -> vector<16x16xf32>
      %42 = arith.mulf %41, %26 : vector<16x16xf32>
      %c1_i32_15 = arith.constant 1 : i32
      %43 = tpu.dynamic_rotate %35 by %c1_i32_15 dim 1 : vector<16x16xf32>, i32 -> vector<16x16xf32>
      %44 = arith.mulf %43, %31 : vector<16x16xf32>
      %45 = arith.addf %42, %44 : vector<16x16xf32>
      %46 = arith.mulf %40, %40 : vector<16x16xf32>
      %47 = arith.mulf %45, %45 : vector<16x16xf32>
      %48 = arith.addf %46, %47 : vector<16x16xf32>
      %cst_16 = arith.constant 9.99999997E-7 : f32
      %49 = vector.broadcast %cst_16 : f32 to vector<16x16xf32>
      %50 = arith.addf %48, %49 : vector<16x16xf32>
      %51 = math.sqrt %50 : vector<16x16xf32>
      %52 = arith.index_cast %arg3 : i32 to index
      %c0_17 = arith.constant 0 : index
      %c0_18 = arith.constant 0 : index
      %53 = vector.load %arg2[%52, %c0_17, %c0_18] : memref<3x16x16xf32, #tpu.memory_space<vmem>>, vector<1x16x16xf32>
      %54 = vector.shape_cast %53 : vector<1x16x16xf32> to vector<16x16xf32>
      %55 = vector.shape_cast %51 : vector<16x16xf32> to vector<1x16x16xf32>
      tpu.vector_store %arg2[%52, %c0_17, %c0_18], %55 {strides = array<i32>} : memref<3x16x16xf32, #tpu.memory_space<vmem>>, vector<1x16x16xf32>,
    }
    %c3_i32_10 = arith.constant 3 : i32
    return
  }
  func.func @transform_0(%arg0: i32) -> (i32, i32, i32) {
    %c0_i32 = arith.constant 0 : i32
    %c0_i32_0 = arith.constant 0 : i32
    %c0_i32_1 = arith.constant 0 : i32
    return %arg0, %c0_i32, %c0_i32_0 : i32, i32, i32
  }
  func.func @transform_1(%arg0: i32) -> (i32, i32, i32) {
    %c0_i32 = arith.constant 0 : i32
    %c0_i32_0 = arith.constant 0 : i32
    %c0_i32_1 = arith.constant 0 : i32
    return %arg0, %c0_i32, %c0_i32_0 : i32, i32, i32
  }
}

</mosaic_0001>

<bundles_post_ra>
// kernel: tpu_custom_call.1
= control target key start
LH: loop header
LB: loop body
LE: loop exit
PB: predicated region body
PF: predicated region fallthrough
CT: control target
= control target key end

     0   :  { %6 = vsyncpa [#allocation3], 0  ;;  %s864_s0 = inlined_call_operand.hbm [shape: f32[6,16,16], index: 0, kind: input, shape index: {}]   ;;  %s865_s1 = inlined_call_operand.hbm [shape: f32[6,16,16], index: 1, kind: output, shape index: {}]  }
   0x1   :  { %8 = vsyncpa [#allocation3 + $0x1], 0 }
   0x2   :  { %9 = vsyncpa [#allocation4], 0 }
   0x3   :  { %11 = vsyncpa [#allocation4 + $0x1], 0  ;;  %s590_s6 = smov 0   ;;  %s592_s7 = smov 0  }
   0x4   :  { %s594_s8 = smov 0   ;;  %s596_s9 = smov 0  }
   0x5 LB: > { %s611_s10 = sadd.s32 4294967295, %s562_s9   ;;  %s375_s11 = sadd.s32 4294967294, %s562_s9   ;;  %s562_s9 = sphi %s596_s9, %s885_s9   ;;  %s558_s8 = sphi %s594_s8, %s884_s8   ;;  %s554_s7 = sphi %s592_s7, %s883_s7   ;;  %s550_s6 = sphi %s590_s6, %s882_s6  }
   0x6   : > { %s615_s12 = sadd.s32 1, %s562_s9   ;;  %s24_s13 = sadd.s32 1, %s558_s8 }
   0x7   : > { %s21_s14 = ssub.s32 %s562_s9, %s615_s12  ;;  %p31_p0 = scmp.ne.s32.totalorder %s558_s8, %s554_s7 }
   0x8   : > { %p22_p1 = scmp.eq.s32.totalorder %s21_s14, 0  ;;  %p32_p2 = scmp.eq.s32.totalorder %s562_s9, 0 }
   0x9   : > { %p37_p3 = scmp.ne.s32.totalorder %s554_s7, %s550_s6  ;;  %p38_p4 = scmp.eq.s32.totalorder %s611_s10, 0 }
   0xa   : > { %s627_s15 = scalar_select %p22_p1, %s558_s8, %s24_s13  }
   0xb   : > { %p33_p5 = por %p32_p2, %p31_p0  ;;  %p629_p6 = por %p38_p4, %p37_p3 }
   0xc   : > { %p61_p7 = scmp.eq.s32.totalorder %s611_s10, 1  ;;  %p67_p8 = scmp.eq.s32.totalorder %s375_s11, 1 }
   0xd   : > { %p406_p10 = scmp.lt.s32.totalorder %s562_s9, 2  ;;  %s87_s19 = sand.u32 1, %s558_s8  }
   0xe   : > { %p636_p11 = por %p61_p7, %p31_p0  ;;  %p640_p12 = por %p67_p8, %p37_p3 }
   0xf   : > { %s390_s20 = smul.u32 768, %s562_s9  ;;  %p651_p13 = pnand %p406_p10, %p33_p5 }
  0x10   : > { %s868_s17 = scalar_select %p636_p11, 1, 0 }
  0x11   : > { %s869_s18 = scalar_select %p640_p12, 1, 0 }
  0x12   : > { %s392_s21 = smul.u32 48, %s87_s19  ;;  %s649_s24 = scalar_lea.hbm %s864_s0, %s390_s20 }
  0x13   : > { %s657_s28 = scalar_lea.sflag [#allocation3], %s87_s19  ;;  %s462_s29 = scalar_lea.hbm %s649_s24, 768 }
  0x14   : > { %s91_s26 = scalar_lea.vmem [#allocation2], %s392_s21  ;;  %p463_p0 = scmp.ne.s32.totalorder %s649_s24, %s462_s29 }
  0x15   : > { %s99_s27 = sshll.u32 %s91_s26, 4  ;;  %p464_p1 = pneg %p651_p13  ;;  %s655_s27 = int_to_ptr.vmem [resolvable:$true] %s99_s27 }
  0x16   : > { %s467_s3 = scalar_lea.hbm %s864_s0, 1536  ;;  %p468_p4 = scmp.lt.u32.totalorder %s649_s24, %s864_s0 }
  0x17   : > { %p465_p2 = pnand %p464_p1, %p463_p0  ;;  %p469_p5 = scmp.lt.u32.totalorder %s467_s3, %s462_s29 }
  0x18   : > { %p471_p8 = scmp.lt.u32.totalorder %s462_s29, %s649_s24 }
  0x19   : > { %p466_p3 = pneg %p465_p2  ;;  %p470_p7 = por %p469_p5, %p468_p4 }
  0x1b   : > { %p472_p10 = por %p471_p8, %p470_p7 }
  0x1d   : > { %p473_p9 = pnand %p472_p10, %p466_p3 }
  0x1f   : > { %476 = shalt.err (!%p473_p9)
}
  0x20   : > { %s477_s11 = scalar_lea.vmem %s655_s27, 768  ;;  %s568_s13 = smov [#allocation2]  }
  0x21   : > { %p478_p0 = scmp.ne.s32.totalorder %s655_s27, %s477_s11  ;;  %s482_s14 = sshll.u32 %s568_s13, 4  ;;  %s483_s14 = int_to_ptr.vmem [resolvable:$false] %s482_s14 }
  0x22   : > { %s484_s19 = scalar_lea.vmem %s483_s14, 1536  ;;  %p485_p11 = scmp.lt.s32.totalorder %s655_s27, %s483_s14 }
  0x23   : > { %p480_p2 = pnand %p478_p0, %p464_p1  ;;  %p486_p4 = scmp.lt.s32.totalorder %s484_s19, %s477_s11 }
  0x25   : > { %p481_p12 = pneg %p480_p2  ;;  %p487_p5 = por %p486_p4, %p485_p11 }
  0x27   : > { %p488_p7 = pnand %p487_p5, %p481_p12 }
  0x29   : > { %491 = shalt.err (!%p488_p7)
}
  0x2a   : > { %s569_s20 = smov 128   ;;  %s570_s21 = smov 8  }
  0x2b   : > { %401 = dma.hbm_to_vmem [thread:$0]  (!%p651_p13), %s649_s24, 768, %s655_s27, %s657_s28, %s569_s20, %s569_s20, %s570_s21  }
  0x2c   : > { %p380_p9 = scmp.ge.s32.totalorder %s562_s9, 1  ;;  %p107_p1 = scmp.lt.s32.totalorder %s562_s9, 3 }
  0x2e   : > { %p108_p3 = pnand %p380_p9, %p107_p1 }
  0x2f   : > { %s688_s22 = sand.u32 (!%p108_p3), 1, %s554_s7   ;;  %v138_v0 = vlaneseq (!%p108_p3) }
  0x30   : > { %111 = sbr.rel (%p108_p3) target bundleno = 807 (0x327), region = 24  ;;  %s114_s26 = scalar_lea.sflag (!%p108_p3), [#allocation3], %s688_s22 }
  0x31   : > { %s393_s23 = smul.u32 (!%p108_p3), 48, %s688_s22 }
  0x33   : > { %s694_s29 = scalar_lea.vmem (!%p108_p3), [#allocation2], %s393_s23 }
  0x37   : > { %541 = dma.done.wait (%p629_p6), %s114_s26, 768  }
  0x38   : > { %543 = vsyncadd (%p629_p6), %s114_s26, 4294966528  ;;  %v144_v1 = vand.u32 127, %v138_v0  ;;  %v700_v2 = vshrl.u32 %v138_v0, 7  ;;  %s571_s24 = smov 16   ;;  %s572_s25 = smov 1   ;;  %vm160_vm6 = vcmask 1047680  }
  0x39   : > { %s573_s16 = smov 15   ;;  %s764_s27 = scalar_lea.vmem [#allocation5], %s393_s23 }
  0x3a   : > { %v145_v3 = vcvt.s32.f32 %v144_v1  ;;  %v140_v4 = vadd.s32 8, %v700_v2  ;;  %v141_v5 = vcvt.s32.f32 %v700_v2  ;;  %vm148_vm0 = vcmp.lt.s32.totalorder %v700_v2, 7  ;;  %s766_s28 = smov 0  }
  0x3b   : > { %vm155_vm1 = vcmp.lt.s32.totalorder %v700_v2, 1 }
  0x3c   : > { %161 = vrot.lane.b32.xlu0 %v145_v3, %s571_s24  ;;  %v142_v6 = vcvt.s32.f32 %v140_v4  ;;  %v146_v7 = vrot.slane %v141_v5, 1  ;;  %v153_v8 = vrot.slane %v141_v5, 7  ;;  %168 = vrot.lane.b32.xlu1 %v145_v3, %s572_s25 }
  0x3e   : > { %v147_v9 = vrot.slane %v142_v6, 1  ;;  %v154_v10 = vrot.slane %v142_v6, 7 }
  0x40   : > { %v149_v11 = vsel %vm148_vm0, %v146_v7, %v147_v9  ;;  %v150_v12 = vsel %vm148_vm0, %v147_v9, %v146_v7  ;;  %v156_v13 = vsel %vm155_vm1, %v153_v8, %v154_v10  ;;  %v157_v14 = vsel %vm155_vm1, %v154_v10, %v153_v8  ;;  %172 = vrot.lane.b32.xlu1 %v145_v3, %s573_s16 }
  0x41   : > { %v715_v15 = vsub.f32 %v149_v11, %v141_v5  ;;  %v717_v16 = vsub.f32 %v150_v12, %v142_v6  ;;  %v719_v17 = vsub.f32 %v157_v14, %v141_v5  ;;  %v721_v18 = vsub.f32 %v156_v13, %v142_v6 }
  0x43   : > { %v176_v19 = vand.u32 2147483647, %v715_v15  ;;  %v177_v20 = vand.u32 2147483647, %v717_v16  ;;  %v182_v21 = vand.u32 2147483647, %v719_v17 }
  0x44   : > { %v183_v22 = vand.u32 2147483647, %v721_v18 }
  0x45   : > { %vm727_vm2 = vcmp.eq.f32.partialorder %v176_v19, 1.0  ;;  %vm731_vm3 = vcmp.eq.f32.partialorder %v177_v20, 1.0  ;;  %vm735_vm4 = vcmp.eq.f32.partialorder %v182_v21, 1.0 }
  0x46   : > { %v180_v26 = vsel %vm727_vm2, %v715_v15, 0.0  ;;  %v181_v27 = vsel %vm731_vm3, %v717_v16, 0.0  ;;  %vm745_vm5 = vcmp.eq.f32.partialorder %v183_v22, 1.0  ;;  %v186_v29 = vsel %vm735_vm4, %v719_v17, 0.0 }
  0x47   : > { %v187_v30 = vsel %vm745_vm5, %v721_v18, 0.0 }
  0xae   : > { %v162_v31 = vpop.permute.xlu0 %161  ;;  %v169_v33 = vpop.permute.xlu1 %168 }
  0xaf   : > { %v163_v32 = vsel %vm160_vm6, %v162_v31, %v145_v3 }
  0xb0   : > { %164 = vrot.lane.b32.xlu0 %v163_v32, %s571_s24 }
  0xb2   : > { %v173_v34 = vpop.permute.xlu1 %172 }
 0x122   : > { %v165_v35 = vpop.permute.xlu0 %164 }
 0x123   : > { %v166_v36 = vsel %vm160_vm6, %v165_v35, %v145_v3 }
 0x124   : > { %v171_v37 = vsub.f32 %v166_v36, %v169_v33  ;;  %v175_v38 = vsub.f32 %v166_v36, %v173_v34 }
 0x126   : > { %v188_v39 = vand.u32 2147483647, %v171_v37  ;;  %v191_v40 = vand.u32 2147483647, %v175_v38 }
 0x128   : > { %vm189_vm7 = vcmp.eq.f32.partialorder %v188_v39, 1.0  ;;  %vm192_vm8 = vcmp.eq.f32.partialorder %v191_v40, 1.0 }
 0x129   : > { %v758_v41 = vsel %vm189_vm7, %v171_v37, 0.0  ;;  %v760_v42 = vsel %vm192_vm8, %v175_v38, 0.0 }
 0x12a LB: >> { %s381_s30 = sshll.u32 %s566_s28, 4  ;;  %s574_s3 = smov 16   ;;  %vm275_vm9 = vcmask 130048   ;;  %s566_s28 = sphi %s766_s28, %s199_s28  }
 0x12b   : >> { %s201_s2 = scalar_lea.vmem %s694_s29, %s381_s30 [#allocation2]  ;;  %s575_s4 = smov 114  }
 0x12c   : >> { %v202_v43 = vld [vmem:[%s201_s2] sm:$0xff]  ;;  %v203_v44 = vld [vmem:[%s201_s2 + $0x8] sm:$0xff]  ;;  %s576_s5 = smov 127   ;;  %s274_s11 = scalar_lea.vmem %s764_s27, %s381_s30 [#allocation5] }
 0x12d   : >> { %218 = vrot.lane.b32.xlu0 %v202_v43, %s574_s3  ;;  %v205_v63 = vrot.slane %v203_v44, 1  ;;  %v211_v0 = vrot.slane %v203_v44, 7  ;;  %v204_v1 = vrot.slane %v202_v43, 1  ;;  %v210_v3 = vrot.slane %v202_v43, 7  ;;  %s199_s28 = sadd.s32 1, %s566_s28  }
 0x12e   : >> { %p196_p6 = scmp.ge.s32.totalorder %s199_s28, 3  }
 0x12f   : >> { %v206_v4 = vsel %vm148_vm0, %v204_v1, %v205_v63  ;;  %v213_v5 = vsel %vm155_vm1, %v211_v0, %v210_v3  ;;  %v207_v8 = vsel %vm148_vm0, %v205_v63, %v204_v1  ;;  %v212_v9 = vsel %vm155_vm1, %v210_v3, %v211_v0  ;;  %s391_s13 = smul.u32 (%p196_p6), 768, %s611_s10  ;;  %s293_s14 = sshll.u32 (%p196_p6), %s764_s27, 4  ;;  %s820_s14 = int_to_ptr.vmem [resolvable:$true] %s293_s14 }
 0x130   : >> { %v208_v6 = vmul.f32 %v206_v4, %v180_v26  ;;  %v214_v7 = vmul.f32 %v213_v5, %v186_v29  ;;  %v209_v11 = vmul.f32 %v207_v8, %v181_v27  ;;  %v215_v12 = vmul.f32 %v212_v9, %v187_v30  ;;  %s279_s23 = scalar_lea.sflag (%p196_p6), [#allocation4], %s688_s22  ;;  %s492_s26 = scalar_lea.vmem (%p196_p6), %s820_s14, 768 }
 0x131   : >> { %221 = vrot.lane.b32.xlu0 %v203_v44, %s574_s3  ;;  %s818_s21 = scalar_lea.hbm (%p196_p6), %s865_s1, %s391_s13  ;;  %p493_p11 = scmp.ne.s32.totalorder (%p196_p6), %s820_s14, %s492_s26 }
 0x132   : >> { %v216_v10 = vadd.f32 %v214_v7, %v208_v6  ;;  %v217_v14 = vadd.f32 %v215_v12, %v209_v11  ;;  %p879_p12 = scmp.ne.s32.totalorder (%p196_p6), %s868_s17, 0  ;;  %s577_s29 = smov (%p196_p6), [#allocation5]  }
 0x133   : > { %s496_s24 = sshll.u32 (%p196_p6), %s577_s29, 4  ;;  %s497_s24 = int_to_ptr.vmem [resolvable:$false] %s496_s24 }
 0x134   : >> { %v244_v13 = vmul.f32 %v216_v10, %v216_v10  ;;  %v245_v21 = vmul.f32 %v217_v14, %v217_v14  ;;  %p494_p13 = pnand (%p196_p6), %p493_p11, %p879_p12  ;;  %s498_s10 = scalar_lea.vmem (%p196_p6), %s497_s24, 1536 }
 0x135   : > { %p499_p10 = scmp.lt.s32.totalorder (%p196_p6), %s820_s14, %s497_s24  ;;  %p500_p0 = scmp.lt.s32.totalorder (%p196_p6), %s498_s10, %s492_s26 }
 0x136   : > { %p495_p8 = pneg (%p196_p6), %p494_p13 }
 0x137   : > { %p501_p2 = por (%p196_p6), %p500_p0, %p499_p10 }
 0x139   : > { %p502_p4 = pnand (%p196_p6), %p501_p2, %p495_p8 }
 0x19f   : >> { %v219_v45 = vpop.permute.xlu0 %218 }
 0x1a0   : >> { %v220_v46 = vsel %vm160_vm6, %v219_v45, %v202_v43 }
 0x1a1   : >> { %224 = vrot.lane.b32.xlu1 %v220_v46, %s574_s3 }
 0x1a3   : >> { %v222_v47 = vpop.permute.xlu0 %221 }
 0x1a4   : >> { %v223_v48 = vsel %vm160_vm6, %v222_v47, %v203_v44 }
 0x1a5   : >> { %226 = vrot.lane.b32.xlu1 %v223_v48, %s574_s3 }
 0x213   : >> { %v225_v49 = vpop.permute.xlu1 %224 }
 0x214   : >> { %v228_v50 = vsel %vm160_vm6, %v225_v49, %v202_v43 }
 0x215   : >> { %v232_v51 = vmul.f32 %v228_v50, %v760_v42  ;;  %v230_v55 = vmul.f32 %v228_v50, %v758_v41 }
 0x217   : >> { %236 = vrot.lane.b32.xlu0 %v232_v51, %s575_s4  ;;  %v227_v52 = vpop.permute.xlu1 %226 }
 0x218   : >> { %v229_v53 = vsel %vm160_vm6, %v227_v52, %v203_v44 }
 0x219   : >> { %v233_v54 = vmul.f32 %v229_v53, %v760_v42  ;;  %v231_v58 = vmul.f32 %v229_v53, %v758_v41 }
 0x21b   : >> { %238 = vrot.lane.b32.xlu1 %v233_v54, %s575_s4 }
 0x289   : >> { %v237_v56 = vpop.permute.xlu0 %236 }
 0x28a   : >> { %v242_v57 = vadd.f32 %v237_v56, %v230_v55 }
 0x28c   : >> { %v246_v59 = vmul.f32 %v242_v57, %v242_v57 }
 0x28d   : >> { %v239_v60 = vpop.permute.xlu1 %238 }
 0x28e   : >> { %v243_v61 = vadd.f32 %v239_v60, %v231_v58  ;;  %250 = vrot.lane.b32.xlu0 %v246_v59, %s576_s5 }
 0x290   : >> { %v247_v62 = vmul.f32 %v243_v61, %v243_v61 }
 0x292   : >> { %252 = vrot.lane.b32.xlu1 %v247_v62, %s576_s5 }
 0x300   : >> { %v251_v19 = vpop.permute.xlu0 %250 }
 0x301   : >> { %v256_v20 = vadd.f32 %v251_v19, %v244_v13 }
 0x303   : >> { %v258_v22 = vadd.f32 1e-06, %v256_v20 }
 0x304   : >> { %v253_v31 = vpop.permute.xlu1 %252 }
 0x305   : >> { %458 = vrsqrt.f32 %v258_v22  ;;  %v257_v32 = vadd.f32 %v253_v31, %v245_v21  ;;  %vm262_vm10 = vcmp.eq.f32.partialorder %v258_v22, inf  ;;  %v265_v36 = vand.u32 2147483648, %v258_v22 }
 0x306   : >> { %vm264_vm11 = vcmp.eq.f32.partialorder %v258_v22, 0.0 }
 0x307   : >> { %v259_v33 = vadd.f32 1e-06, %v257_v32 }
 0x309   : >> { %460 = vrsqrt.f32 %v259_v33  ;;  %vm269_vm12 = vcmp.eq.f32.partialorder %v259_v33, inf  ;;  %v272_v43 = vand.u32 2147483648, %v259_v33  ;;  %vm271_vm13 = vcmp.eq.f32.partialorder %v259_v33, 0.0 }
 0x30f   : >> { %v459_v34 = vpop.eup %458 }
 0x310   : >> { %v261_v35 = vmul.f32 %v459_v34, %v258_v22 }
 0x312   : >> { %v263_v37 = vsel %vm262_vm10, %v258_v22, %v261_v35  ;;  %198 = sbr.rel (!%p196_p6) target bundleno = 298 (0x12a), region = 78 }
 0x313   : >> { %v266_v38 = vsel %vm264_vm11, %v265_v36, %v263_v37  ;;  %v461_v39 = vpop.eup %460 }
 0x314   : >> { %276 = vst.msk [vmem:[%s274_s11] sm:$0xff] %vm275_vm9, %v266_v38  ;;  %v268_v40 = vmul.f32 %v461_v39, %v259_v33 }
 0x316   : >> { %v270_v44 = vsel %vm269_vm12, %v259_v33, %v268_v40 }
 0x317   : >> { %v273_v45 = vsel %vm271_vm13, %v272_v43, %v270_v44 }
 0x318   : >> { %277 = vst.msk [vmem:[%s274_s11 + $0x8] sm:$0xff] %vm275_vm9, %v273_v45 }
 0x319   : > { %505 = shalt.err (!%p502_p4)
}
 0x31a   : > { %s506_s25 = scalar_lea.hbm %s818_s21, 768  ;;  %s510_s28 = scalar_lea.hbm %s865_s1, 1536 }
 0x31b   : > { %p507_p5 = scmp.ne.s32.totalorder %s818_s21, %s506_s25  ;;  %p511_p1 = scmp.lt.u32.totalorder %s818_s21, %s865_s1 }
 0x31c   : > { %p512_p3 = scmp.lt.u32.totalorder %s510_s28, %s506_s25  ;;  %p514_p11 = scmp.lt.u32.totalorder %s506_s25, %s818_s21 }
 0x31d   : > { %p508_p7 = pnand %p507_p5, %p879_p12 }
 0x31e   : > { %p513_p6 = por %p512_p3, %p511_p1 }
 0x31f   : > { %p509_p9 = pneg %p508_p7 }
 0x320   : > { %p515_p13 = por %p514_p11, %p513_p6 }
 0x322   : > { %p516_p8 = pnand %p515_p13, %p509_p9 }
 0x324   : > { %519 = shalt.err (!%p516_p8)
}
 0x325   : > { %s578_s3 = smov 128   ;;  %s579_s4 = smov 8  }
 0x326   : > { %396 = dma.vmem_to_hbm [thread:$0]  (%p879_p12), %s820_s14, 768, %s818_s21, %s279_s23, %s578_s3, %s578_s3, %s579_s4  }
 0x327 PF: > { %s308_s5 = sand.u32 1, %s550_s6   ;;  %p880_p10 = scmp.ne.s32.totalorder %s869_s18, 0 }
 0x328   : > { %p881_p0 = scmp.ge.s32.totalorder %s562_s9, 2  ;;  %s309_s11 = scalar_lea.sflag [#allocation4], %s308_s5 }
 0x32a   : > { %p403_p2 = pnand %p881_p0, %p880_p10 }
 0x32c   : > { %545 = dma.done.wait (!%p403_p2), %s309_s11, 768  }
 0x32d   : > { %547 = vsyncadd (!%p403_p2), %s309_s11, 4294966528  ;;  %p14_p4 = scmp.ge.s32.totalorder %s615_s12, 4   ;;  %s882_s6 = smov %s554_s7 }
 0x32e   : > { %s883_s7 = smov %s558_s8  ;;  %s884_s8 = smov %s627_s15 }
 0x32f   : > { %s885_s9 = smov %s615_s12  ;;  %16 = sbr.rel (!%p14_p4) target bundleno = 5 (0x5), region = 89 }
 0x336   :  { %314 = vsyncpa [#allocation3], 1 }
 0x337   :  { %316 = vsyncpa [#allocation3 + $0x1], 1 }
 0x338   :  { %317 = vsyncpa [#allocation4], 1 }
 0x339   :  { %319 = vsyncpa [#allocation4 + $0x1], 1 }

</bundles_post_ra>
